<compile_context>
chip_gen: v6e
topology: v6e:2x2x1
jax: 0.10.0
libtpu: 0.0.40
codegen_flags: <defaults>
</compile_context>

<pallas_src>
import math
from functools import partial

import jax
import jax.numpy as jnp
from jax.experimental import pallas as pl
from jax.experimental.pallas import tpu as pltpu

# ----------------------------- scaled-down config ------------------------------
B = 2
T = 8                        # sequence length
N_HEAD = 8                   # orig 32
HEAD_SIZE = 16               # orig 128
N_EMBD = N_HEAD * HEAD_SIZE  # 128 (orig 4096)
ADAPTER_LEN = 4              # adapter_prompt_length (orig 10)
W_HEADS = 4                  # orig 20
W_HEAD_DIM = HEAD_SIZE // 2  # orig 64
N_STATE = W_HEADS * W_HEAD_DIM  # 32 (orig 1280)
DOWN_DIM = N_STATE // 16     # 2 (orig 80)
A_SEQ = 16                   # audio frames (orig 1500)
EPS = 1e-5                   # lit_llama RMSNorm eps
NEG_INF = -1e30

# Safe on every generation (v7x physical VMEM is 64 MiB).  On v6e/v5e this could be raised to
# 64-96 MiB together with larger GEMM tiles for the weight-streaming-bound projections.
_VMEM_LIMIT = 32 * 1024 * 1024


def _fit(dim, target, align):
    """Largest tile <= target that divides dim and is `align`-aligned.
    Falls back to the full dim (a full-extent block is always legal); at the configs used here
    the full-dim fallback is small enough for VMEM."""
    if dim <= target:
        return dim
    t = (target // align) * align
    while t >= align:
        if dim % t == 0:
            return t
        t -= align
    return dim


# ----------------------------- tiled linear (bf16 MXU) --------------------------
def _linear_kernel(x_ref, w_ref, o_ref, acc_ref):
    @pl.when(pl.program_id(2) == 0)
    def _():
        acc_ref[...] = jnp.zeros_like(acc_ref)

    acc_ref[...] += jnp.dot(x_ref[...], w_ref[...],
                            preferred_element_type=jnp.float32)

    @pl.when(pl.program_id(2) == pl.num_programs(2) - 1)
    def _():
        o_ref[...] = acc_ref[...].astype(o_ref.dtype)


def linear_pallas(x, w, *, out_dtype=jnp.float32, tm=256, tn=512, tk=1024):
    """x: (M, K) bf16, w: (K, N) bf16 -> (M, N) out_dtype; K-reduction grid + f32 VMEM accumulator."""
    M, K = x.shape
    N = w.shape[1]
    tm = _fit(M, tm, 16)     # 16-row alignment for bf16 sublane packing
    tn = _fit(N, tn, 128)
    tk = _fit(K, tk, 128)
    return pl.pallas_call(
        _linear_kernel,
        out_shape=jax.ShapeDtypeStruct((M, N), out_dtype),
        grid=(M // tm, N // tn, K // tk),
        in_specs=[pl.BlockSpec((tm, tk), lambda i, j, k: (i, k)),
                  pl.BlockSpec((tk, tn), lambda i, j, k: (k, j))],
        out_specs=pl.BlockSpec((tm, tn), lambda i, j, k: (i, j)),
        scratch_shapes=[pltpu.VMEM((tm, tn), jnp.float32)],
        compiler_params=pltpu.CompilerParams(
            dimension_semantics=("parallel", "parallel", "arbitrary"),
            vmem_limit_bytes=_VMEM_LIMIT),
    )(x, w)


# ----------------------- fused RMSNorm + linear (adapter prefix) ----------------
def _rms_linear_kernel(x_ref, s_ref, w_ref, o_ref):
    x = x_ref[...]
    xn = x * jax.lax.rsqrt(jnp.mean(x * x, axis=-1, keepdims=True) + EPS) * s_ref[...]
    o_ref[...] = jnp.dot(xn.astype(w_ref.dtype), w_ref[...],
                         preferred_element_type=jnp.float32).astype(o_ref.dtype)


def rms_linear_pallas(x, scale, w, *, tn=512):
    """x: (M, K) f32, scale: (K,) f32, w: (K, N) bf16 -> rmsnorm(x) @ w : (M, N) bf16."""
    M, K = x.shape
    N = w.shape[1]
    tn = _fit(N, tn, 128)
    return pl.pallas_call(
        _rms_linear_kernel,
        out_shape=jax.ShapeDtypeStruct((M, N), jnp.bfloat16),
        grid=(N // tn,),
        in_specs=[pl.BlockSpec((M, K), lambda j: (0, 0)),
                  pl.BlockSpec((1, K), lambda j: (0, 0)),
                  pl.BlockSpec((K, tn), lambda j: (0, j))],
        out_specs=pl.BlockSpec((M, tn), lambda j: (0, j)),
        compiler_params=pltpu.CompilerParams(
            dimension_semantics=("parallel",),
            vmem_limit_bytes=_VMEM_LIMIT),
    )(x, scale.reshape(1, K), w)


# -------------- fused whisper K/V pipeline (linear -> RMSNorm -> silu bottleneck) --------------
def _whisper_kv_kernel(af_ref, wk_ref, wv_ref, bv_ref, sk_ref, sv_ref,
                       down_ref, up_ref, ko_ref, vo_ref):
    af = af_ref[...]  # (tr, N_STATE) bf16

    def _rms(t, s):
        return t * jax.lax.rsqrt(jnp.mean(t * t, axis=-1, keepdims=True) + EPS) * s

    def _bottleneck(t):
        h = jnp.dot(t.astype(down_ref.dtype), down_ref[...],
                    preferred_element_type=jnp.float32)
        h = h * (1.0 / (1.0 + jnp.exp(-h)))          # silu, f32
        return jnp.dot(h.astype(up_ref.dtype), up_ref[...],
                       preferred_element_type=jnp.float32)

    k = jnp.dot(af, wk_ref[...], preferred_element_type=jnp.float32)
    v = jnp.dot(af, wv_ref[...], preferred_element_type=jnp.float32) + bv_ref[...]
    ko_ref[...] = _bottleneck(_rms(k, sk_ref[...])).astype(ko_ref.dtype)
    vo_ref[...] = _bottleneck(_rms(v, sv_ref[...])).astype(vo_ref.dtype)


def whisper_kv_pallas(af, wk, wv, bv, sk, sv, down_p, up_p, *, tr=256):
    """af: (R, N_STATE) bf16 -> (key, value) each (R, N_STATE) bf16 (f32 internal math)."""
    R, NS = af.shape
    DP = down_p.shape[1]
    tr = _fit(R, tr, 16)
    return pl.pallas_call(
        _whisper_kv_kernel,
        out_shape=(jax.ShapeDtypeStruct((R, NS), jnp.bfloat16),
                   jax.ShapeDtypeStruct((R, NS), jnp.bfloat16)),
        grid=(R // tr,),
        in_specs=[pl.BlockSpec((tr, NS), lambda r: (r, 0)),
                  pl.BlockSpec((NS, NS), lambda r: (0, 0)),
                  pl.BlockSpec((NS, NS), lambda r: (0, 0)),
                  pl.BlockSpec((1, NS), lambda r: (0, 0)),
                  pl.BlockSpec((1, NS), lambda r: (0, 0)),
                  pl.BlockSpec((1, NS), lambda r: (0, 0)),
                  pl.BlockSpec((NS, DP), lambda r: (0, 0)),
                  pl.BlockSpec((DP, NS), lambda r: (0, 0))],
        out_specs=(pl.BlockSpec((tr, NS), lambda r: (r, 0)),
                   pl.BlockSpec((tr, NS), lambda r: (r, 0))),
        compiler_params=pltpu.CompilerParams(
            dimension_semantics=("parallel",),
            vmem_limit_bytes=_VMEM_LIMIT),
    )(af, wk, wv, bv, sk, sv, down_p, up_p)


# ---------------- fused attention: causal self + adapter + whisper in one launch ----------------
def _fused_attn_kernel(gates_ref, nh_ref, q_ref, k_ref, v_ref, ak_ref, av_ref,
                       hs_ref, pid_ref, wk_ref, wv_ref, o_ref,
                       *, scale, w_heads, w_head_dim):
    f32 = jnp.float32
    bf16 = jnp.bfloat16
    g_adapter = gates_ref[0]      # gating_factor (SMEM scalar)
    g_whisper = gates_ref[1]      # projection_gating_factor

    q = q_ref[0]                  # (H, T, D) bf16
    k = k_ref[0]
    v = v_ref[0]
    H, Tq, D = q.shape
    Wd = w_head_dim

    def _attend(qh, kh, vh, bias=None):
        s = jnp.einsum('htd,hsd->hts', qh, kh,
                       preferred_element_type=f32) * scale
        if bias is not None:
            s = s + bias
        m = jnp.max(s, axis=-1, keepdims=True)
        p = jnp.exp(s - m)
        l = jnp.sum(p, axis=-1, keepdims=True)
        o = jnp.einsum('hts,hsd->htd', p.astype(vh.dtype), vh,
                       preferred_element_type=f32)
        return o / l

    # 1) causal self-attention; mask built in-register (no (T,T) bias stream)
    ti = jax.lax.broadcasted_iota(jnp.int32, (Tq, Tq), 0)
    si = jax.lax.broadcasted_iota(jnp.int32, (Tq, Tq), 1)
    causal = jnp.where(ti >= si, 0.0, NEG_INF).astype(f32)[None]
    y = _attend(q, k, v, causal)

    # 2) adapter-prompt attention (gated, unmasked)
    y = y + g_adapter * _attend(q, ak_ref[...], av_ref[...])

    # 3) whisper cross-attention.  The torch identity padding of K/V is never materialized:
    #    score identity term  = q2 @ pid   (pid[d, a] = 1 iff a == d, a tiny (D, A) eye slab)
    #    value identity term  = prob lane slice
    hs_mat = hs_ref[...]          # (D, D) bf16, projection_query_matrix_128to128
    pid = pid_ref[...]            # (D, A) bf16 placement eye
    nt_dims = (((1,), (1,)), ((), ()))   # q (T, Wd) x k (A, Wd) -> (T, A)

    # per-head q @ hs (MXU), kept as a static Python list; head mixing uses SMEM scalars
    q_hs = [jnp.dot(q[h], hs_mat, preferred_element_type=f32) for h in range(H)]

    cols = []
    for g in range(H):
        # q2[g] = sum_h nh[h, g] * (q[h] @ hs)
        q2 = q_hs[0] * nh_ref[0, g]
        for h in range(1, H):
            q2 = q2 + q_hs[h] * nh_ref[h, g]
        q2b = q2.astype(bf16)                                  # (T, D)

        if g < w_heads:
            wk_h = wk_ref[0, g]                                # (A, Wd) bf16, real whisper key
            wv_h = wv_ref[0, g]
            s = jax.lax.dot_general(q2b[:, :Wd], wk_h, nt_dims,
                                    preferred_element_type=f32)
            s = s + jnp.dot(q2b[:, Wd:], pid[Wd:, :],
                            preferred_element_type=f32)        # identity tail of the key
        else:
            s = jnp.dot(q2b, pid, preferred_element_type=f32)  # pure-identity head
        s = s * scale                                          # (T, A)

        m = jnp.max(s, axis=-1, keepdims=True)
        p = jnp.exp(s - m)
        l = jnp.sum(p, axis=-1, keepdims=True)
        pb = p.astype(bf16)                                    # matches reference bf16 prob cast
        if g < w_heads:
            o_lo = jnp.dot(pb, wv_h, preferred_element_type=f32)   # (T, Wd)
            o_hi = pb[:, Wd:D].astype(f32)                         # value identity columns
            wy = jnp.concatenate([o_lo, o_hi], axis=-1) / l
        else:
            wy = pb[:, :D].astype(f32) / l

        cols.append(y[g] + g_whisper * wy)                     # (T, D) f32

    # single lane-dense (T, C) store
    o_ref[0] = jnp.concatenate(cols, axis=-1).astype(o_ref.dtype)


def fused_attention_pallas(gates, nh, q, k, v, ak, av, hs_mat, pid, wk, wv):
    """q/k/v: (B, H, T, D) bf16; ak/av: (H, AL, D) bf16; hs_mat: (D, D) bf16; nh: (H, H) f32 (SMEM);
    pid: (D, A_SEQ) bf16; wk/wv: (B, W_HEADS, A_SEQ, Wd) bf16; gates: (2,) f32.
    Returns (B, T, H*D) bf16."""
    B_, H, Tq, D = q.shape
    AL = ak.shape[1]
    WH, A, Wd = wk.shape[1], wk.shape[2], wk.shape[3]
    C = H * D
    kernel = partial(_fused_attn_kernel, scale=1.0 / math.sqrt(D),
                     w_heads=WH, w_head_dim=Wd)
    return pl.pallas_call(
        kernel,
        out_shape=jax.ShapeDtypeStruct((B_, Tq, C), jnp.bfloat16),
        grid=(B_,),
        in_specs=[
            pl.BlockSpec(memory_space=pltpu.MemorySpace.SMEM),       # gates
            pl.BlockSpec(memory_space=pltpu.MemorySpace.SMEM),       # head-mix matrix (scalars)
            pl.BlockSpec((1, H, Tq, D), lambda b: (b, 0, 0, 0)),     # q
            pl.BlockSpec((1, H, Tq, D), lambda b: (b, 0, 0, 0)),     # k
            pl.BlockSpec((1, H, Tq, D), lambda b: (b, 0, 0, 0)),     # v
            pl.BlockSpec((H, AL, D), lambda b: (0, 0, 0)),           # adapter k (batch-shared)
            pl.BlockSpec((H, AL, D), lambda b: (0, 0, 0)),           # adapter v
            pl.BlockSpec((D, D), lambda b: (0, 0)),                  # q_proj_hs
            pl.BlockSpec((D, A), lambda b: (0, 0)),                  # placement eye (batch-shared)
            pl.BlockSpec((1, WH, A, Wd), lambda b: (b, 0, 0, 0)),    # whisper key (real heads)
            pl.BlockSpec((1, WH, A, Wd), lambda b: (b, 0, 0, 0)),    # whisper value (real heads)
        ],
        out_specs=pl.BlockSpec((1, Tq, C), lambda b: (b, 0, 0)),
        compiler_params=pltpu.CompilerParams(
            dimension_semantics=("parallel",),
            vmem_limit_bytes=_VMEM_LIMIT),
    )(gates, nh, q, k, v, ak, av, hs_mat, pid, wk, wv)


# ----------------------------- JAX glue (RoPE, params) -------------------------
def build_rope_cache(seq_len, n_elem, base=10000.0):
    theta = 1.0 / (base ** (jnp.arange(0, n_elem, 2, dtype=jnp.float32) / n_elem))
    idx_theta = jnp.outer(jnp.arange(seq_len, dtype=jnp.float32), theta)
    return jnp.stack([jnp.cos(idx_theta), jnp.sin(idx_theta)], axis=-1)  # (T, n_elem//2, 2)


def apply_rope(x, rope):
    # x: (B, T, n_head, head_size), rope: (T, head_size//2, 2)
    B_, T_, H_, D_ = x.shape
    xs = x.reshape(B_, T_, H_, D_ // 2, 2)
    rc = rope.reshape(1, T_, 1, D_ // 2, 2)
    out = jnp.stack(
        [
            xs[..., 0] * rc[..., 0] - xs[..., 1] * rc[..., 1],
            xs[..., 1] * rc[..., 0] + xs[..., 0] * rc[..., 1],
        ],
        axis=-1,
    )
    return out.reshape(B_, T_, H_, D_)


def init_params(key):
    ks = jax.random.split(key, 16)
    s = 0.02
    f32 = jnp.float32
    p = {}
    # weights stored as (in, out) so that y = x @ W  (equivalent to torch Linear with W^T)
    p["c_attn_w"] = s * jax.random.normal(ks[0], (N_EMBD, 3 * N_EMBD), f32)
    p["c_proj_w"] = s * jax.random.normal(ks[1], (N_EMBD, N_EMBD), f32)
    p["adapter_wte"] = s * jax.random.normal(ks[2], (ADAPTER_LEN, N_EMBD), f32)
    p["gating_factor"] = jnp.array([0.5], f32)
    p["rms_gate_scale"] = 1.0 + 0.1 * jax.random.normal(ks[3], (N_EMBD,), f32)
    p["proj_rms_key_scale"] = 1.0 + 0.1 * jax.random.normal(ks[4], (N_STATE,), f32)
    p["proj_rms_value_scale"] = 1.0 + 0.1 * jax.random.normal(ks[5], (N_STATE,), f32)
    p["proj_key_down"] = jnp.eye(N_STATE, DOWN_DIM, dtype=f32) + s * jax.random.normal(
        ks[6], (N_STATE, DOWN_DIM), f32)
    p["proj_key_up"] = jnp.eye(DOWN_DIM, N_STATE, dtype=f32) + s * jax.random.normal(
        ks[7], (DOWN_DIM, N_STATE), f32)
    p["q_proj_hs"] = jnp.eye(HEAD_SIZE, dtype=f32) + s * jax.random.normal(
        ks[8], (HEAD_SIZE, HEAD_SIZE), f32)
    p["q_proj_nh"] = jnp.eye(N_HEAD, dtype=f32) + s * jax.random.normal(
        ks[9], (N_HEAD, N_HEAD), f32)
    p["proj_gating_factor"] = jnp.array([1.0], f32)
    p["whisper_key_w"] = s * jax.random.normal(ks[10], (N_STATE, N_STATE), f32)
    p["whisper_value_w"] = s * jax.random.normal(ks[11], (N_STATE, N_STATE), f32)
    p["whisper_value_b"] = s * jax.random.normal(ks[12], (N_STATE,), f32)
    return p


# ----------------------------- forward (Pallas-backed) -------------------------
def causal_self_attention_forward(params, x, audio_features, rope, mask):
    # `mask` is lit_llama's causal mask; the fused kernel rebuilds it via iota so it is
    # not streamed to the kernel (a non-causal/padding mask would need the bias input restored).
    B_, T_, C = x.shape
    hs = C // N_HEAD
    bf = lambda a: a.astype(jnp.bfloat16)

    # qkv projection (c_attn, no bias) -- tiled bf16 matmul, f32 accumulation, bf16 writeback
    qkv = linear_pallas(bf(x.reshape(B_ * T_, C)), bf(params["c_attn_w"]),
                        out_dtype=jnp.bfloat16)
    qkv = qkv.reshape(B_, T_, 3 * C)
    q, k, v = jnp.split(qkv, 3, axis=2)
    q = bf(apply_rope(q.reshape(B_, T_, N_HEAD, hs), rope).transpose(0, 2, 1, 3))  # (B,H,T,D)
    k = bf(apply_rope(k.reshape(B_, T_, N_HEAD, hs), rope).transpose(0, 2, 1, 3))
    v = v.reshape(B_, T_, N_HEAD, hs).transpose(0, 2, 1, 3)                        # bf16

    # adapter k/v (batch independent): fused RMSNorm + linear over only the k/v columns, bf16 out
    akv = rms_linear_pallas(params["adapter_wte"], params["rms_gate_scale"],
                            bf(params["c_attn_w"][:, C:]))                         # (AL, 2C) bf16
    ak = akv[:, :C].reshape(ADAPTER_LEN, N_HEAD, hs).transpose(1, 0, 2)            # (H, AL, D)
    av = akv[:, C:].reshape(ADAPTER_LEN, N_HEAD, hs).transpose(1, 0, 2)

    # whisper K/V pipeline: one fused kernel producing both tensors, bf16 writeback
    af = audio_features.reshape(B_ * A_SEQ, N_STATE)
    dp = max(128, -(-DOWN_DIM // 128) * 128)  # lane-dense silu bottleneck (exact zero padding)
    down_p = jnp.zeros((N_STATE, dp), jnp.float32).at[:, :DOWN_DIM].set(params["proj_key_down"])
    up_p = jnp.zeros((dp, N_STATE), jnp.float32).at[:DOWN_DIM, :].set(params["proj_key_up"])
    wkey, wval = whisper_kv_pallas(
        bf(af), bf(params["whisper_key_w"]), bf(params["whisper_value_w"]),
        params["whisper_value_b"].reshape(1, N_STATE),
        params["proj_rms_key_scale"].reshape(1, N_STATE),
        params["proj_rms_value_scale"].reshape(1, N_STATE),
        bf(down_p), bf(up_p))
    # raw .view(B, W_HEADS, A_SEQ, W_HEAD_DIM) exactly as in the torch code; no head padding
    wkey = wkey.reshape(B_, W_HEADS, A_SEQ, W_HEAD_DIM)
    wval = wval.reshape(B_, W_HEADS, A_SEQ, W_HEAD_DIM)

    # tiny placement eye for the identity-padded K columns: pid[d, a] = 1 iff a == d
    pid = bf(jnp.eye(hs, A_SEQ, dtype=jnp.float32))

    # fused attention: causal self + adapter + whisper (q2 projection fused in-kernel)
    gates = jnp.stack([params["gating_factor"][0], params["proj_gating_factor"][0]])
    y = fused_attention_pallas(gates, params["q_proj_nh"], q, k, v, ak, av,
                               bf(params["q_proj_hs"]), pid, wkey, wval)           # (B,T,C) bf16

    # output projection
    y = linear_pallas(y.reshape(B_ * T_, C), bf(params["c_proj_w"]), out_dtype=jnp.float32)
    return y.reshape(B_, T_, C)


# ----------------------------- pure-JAX reference ------------------------------
# Mirrors the kernel's numerics (bf16 matmul operands / intermediate writebacks, f32 accumulation,
# RMSNorm / softmax in f32) so the check is tight.
def reference_forward(params, x, audio_features, rope, mask):
    bf16 = jnp.bfloat16
    f32 = jnp.float32

    def mm(a, b):
        return jnp.dot(a.astype(bf16), b.astype(bf16), preferred_element_type=f32)

    B_, T_, C = x.shape
    hs = C // N_HEAD
    scale = 1.0 / math.sqrt(hs)

    def sdpa(q, k, v, bias):
        s = jnp.einsum("bhtd,bhsd->bhts", q.astype(bf16), k.astype(bf16),
                       preferred_element_type=f32) * scale
        s = s + bias
        m = jnp.max(s, axis=-1, keepdims=True)
        p = jnp.exp(s - m)
        l = jnp.sum(p, axis=-1, keepdims=True)
        o = jnp.einsum("bhts,bhsd->bhtd", p.astype(bf16), v.astype(bf16),
                       preferred_element_type=f32)
        return o / l

    def rms(t, sc):
        return t * jax.lax.rsqrt(jnp.mean(t * t, axis=-1, keepdims=True) + EPS) * sc

    # qkv rounded to bf16 right after the projection (mirrors the kernel's bf16 writeback)
    qkv = mm(x.reshape(B_ * T_, C), params["c_attn_w"]).astype(bf16).reshape(B_, T_, 3 * C)
    q, k, v = jnp.split(qkv, 3, axis=2)
    q = apply_rope(q.reshape(B_, T_, N_HEAD, hs), rope).transpose(0, 2, 1, 3)
    k = apply_rope(k.reshape(B_, T_, N_HEAD, hs), rope).transpose(0, 2, 1, 3)
    v = v.reshape(B_, T_, N_HEAD, hs).transpose(0, 2, 1, 3)
    y = sdpa(q, k, v, jnp.where(mask[0, 0], 0.0, NEG_INF).astype(f32))

    prefix = params["adapter_wte"]
    aqkv = mm(rms(prefix, params["rms_gate_scale"]), params["c_attn_w"])
    ak = aqkv[:, C:2 * C].reshape(1, ADAPTER_LEN, N_HEAD, hs)
    av = aqkv[:, 2 * C:].reshape(1, ADAPTER_LEN, N_HEAD, hs)
    ak = jnp.broadcast_to(ak, (B_, ADAPTER_LEN, N_HEAD, hs)).transpose(0, 2, 1, 3)
    av = jnp.broadcast_to(av, (B_, ADAPTER_LEN, N_HEAD, hs)).transpose(0, 2, 1, 3)
    y = y + params["gating_factor"][0] * sdpa(q, ak, av,
                                              jnp.zeros((T_, ADAPTER_LEN), f32))

    af = audio_features.reshape(B_ * A_SEQ, N_STATE)

    def chain(w, b, rms_scale):
        t = mm(af, w)
        if b is not None:
            t = t + b
        t = rms(t, rms_scale)
        h = mm(t, params["proj_key_down"])
        h = h * (1.0 / (1.0 + jnp.exp(-h)))
        t = mm(h, params["proj_key_up"])
        return t.reshape(B_, W_HEADS, A_SEQ, W_HEAD_DIM)

    key = chain(params["whisper_key_w"], None, params["proj_rms_key_scale"])
    value = chain(params["whisper_value_w"], params["whisper_value_b"],
                  params["proj_rms_value_scale"])

    eye_pad = jnp.broadcast_to(jnp.eye(A_SEQ, hs, dtype=f32)[None, None],
                               (B_, N_HEAD, A_SEQ, hs))
    padded_keys = eye_pad.at[:, :W_HEADS, :, :W_HEAD_DIM].set(key)
    padded_values = eye_pad.at[:, :W_HEADS, :, :W_HEAD_DIM].set(value)

    q2 = jnp.einsum("bhtd,de->bhte", q.astype(bf16), params["q_proj_hs"].astype(bf16),
                    preferred_element_type=f32)
    q2 = jnp.einsum("bhte,hg->bgte", q2, params["q_proj_nh"], preferred_element_type=f32)
    y = y + params["proj_gating_factor"][0] * sdpa(q2, padded_keys, padded_values,
                                                   jnp.zeros((T_, A_SEQ), f32))

    y = y.transpose(0, 2, 1, 3).reshape(B_, T_, C).astype(bf16)
    return mm(y.reshape(B_ * T_, C), params["c_proj_w"]).reshape(B_, T_, C)


# ----------------------------------- main ---------------------------------------
if __name__ == "__main__":
    root = jax.random.PRNGKey(0)
    kp, kx, ka = jax.random.split(root, 3)
    params = init_params(kp)

    x = jax.random.normal(kx, (B, T, N_EMBD), jnp.float32)
    audio_features = jax.random.normal(ka, (B, A_SEQ, N_STATE), jnp.float32)
    rope = build_rope_cache(T, HEAD_SIZE)
    mask = jnp.tril(jnp.ones((T, T), dtype=bool))[None, None]  # causal mask, (1,1,T,T)

    y = causal_self_attention_forward(params, x, audio_features, rope, mask)
    y = jax.block_until_ready(y)

    y_ref = reference_forward(params, x, audio_features, rope, mask)
    assert y.shape == (B, T, N_EMBD)
    max_err = float(jnp.max(jnp.abs(y - y_ref)))
    assert jnp.allclose(y, y_ref, rtol=1e-2, atol=1e-2), f"Pallas mismatch, max_abs_err={max_err}"

    print("KERNEL_OK")
</pallas_src>

<mosaic_0001>
module attributes {stable_mosaic.version = 11 : i64} {
  func.func @_linear_kernel(%arg0: i32, %arg1: i32, %arg2: i32, %arg3: memref<16x128xbf16, #tpu.memory_space<vmem>>, %arg4: memref<128x384xbf16, #tpu.memory_space<vmem>>, %arg5: memref<16x384xbf16, #tpu.memory_space<vmem>>, %arg6: memref<16x384xf32, #tpu.memory_space<vmem>>) attributes {dimension_semantics = [#tpu.dimension_semantics<parallel>, #tpu.dimension_semantics<parallel>, #tpu.dimension_semantics<arbitrary>], iteration_bounds = array<i64: 1, 1, 1>, scalar_prefetch = 0 : i64, scratch_operands = 1 : i64, tpu.core_type = #tpu.core_type<tc>, window_params = [{transform_indices = @transform_0, window_bounds = array<i64: 16, 128>}, {transform_indices = @transform_1, window_bounds = array<i64: 128, 384>}, {transform_indices = @transform_2, window_bounds = array<i64: 16, 384>}]} {
    %c0_i32 = arith.constant 0 : i32
    %0 = arith.cmpi eq, %arg2, %c0_i32 : i32
    %1 = arith.extui %0 : i1 to i32
    %c0_i32_0 = arith.constant 0 : i32
    %2 = arith.cmpi ne, %1, %c0_i32_0 : i32
    scf.if %2 {
      %cst_10 = arith.constant 0.000000e+00 : f32
      %12 = vector.broadcast %cst_10 : f32 to vector<16x384xf32>
      %c0_11 = arith.constant 0 : index
      %c0_12 = arith.constant 0 : index
      %13 = vector.load %arg6[%c0_11, %c0_12] : memref<16x384xf32, #tpu.memory_space<vmem>>, vector<16x384xf32>
      tpu.vector_store %arg6[%c0_11, %c0_12], %12 {strides = array<i32>} : memref<16x384xf32, #tpu.memory_space<vmem>>, vector<16x384xf32>,
    } else {
    }
    %c0 = arith.constant 0 : index
    %c0_1 = arith.constant 0 : index
    %3 = vector.load %arg6[%c0, %c0_1] : memref<16x384xf32, #tpu.memory_space<vmem>>, vector<16x384xf32>
    %c0_2 = arith.constant 0 : index
    %c0_3 = arith.constant 0 : index
    %4 = vector.load %arg3[%c0_2, %c0_3] : memref<16x128xbf16, #tpu.memory_space<vmem>>, vector<16x128xbf16>
    %c0_4 = arith.constant 0 : index
    %c0_5 = arith.constant 0 : index
    %5 = vector.load %arg4[%c0_4, %c0_5] : memref<128x384xbf16, #tpu.memory_space<vmem>>, vector<128x384xbf16>
    %cst = arith.constant dense<0.000000e+00> : vector<16x384xf32>
    %6 = tpu.matmul %4, %5, %cst {dimension_numbers = #tpu.dot_dimension_numbers<[1], [0], [0], [1], [0, 0, 1, 1], [], []>} : vector<16x128xbf16>, vector<128x384xbf16>, vector<16x384xf32> -> vector<16x384xf32>
    %7 = arith.addf %3, %6 : vector<16x384xf32>
    %c0_6 = arith.constant 0 : index
    %c0_7 = arith.constant 0 : index
    %8 = vector.load %arg6[%c0_6, %c0_7] : memref<16x384xf32, #tpu.memory_space<vmem>>, vector<16x384xf32>
    tpu.vector_store %arg6[%c0_6, %c0_7], %7 {strides = array<i32>} : memref<16x384xf32, #tpu.memory_space<vmem>>, vector<16x384xf32>,
    %c0_i32_8 = arith.constant 0 : i32
    %9 = arith.cmpi eq, %arg2, %c0_i32_8 : i32
    %10 = arith.extui %9 : i1 to i32
    %c0_i32_9 = arith.constant 0 : i32
    %11 = arith.cmpi ne, %10, %c0_i32_9 : i32
    scf.if %11 {
      %c0_10 = arith.constant 0 : index
      %c0_11 = arith.constant 0 : index
      %12 = vector.load %arg6[%c0_10, %c0_11] : memref<16x384xf32, #tpu.memory_space<vmem>>, vector<16x384xf32>
      %13 = arith.truncf %12 : vector<16x384xf32> to vector<16x384xbf16>
      %c0_12 = arith.constant 0 : index
      %c0_13 = arith.constant 0 : index
      %14 = vector.load %arg5[%c0_12, %c0_13] : memref<16x384xbf16, #tpu.memory_space<vmem>>, vector<16x384xbf16>
      tpu.vector_store %arg5[%c0_12, %c0_13], %13 {strides = array<i32>} : memref<16x384xbf16, #tpu.memory_space<vmem>>, vector<16x384xbf16>,
    } else {
    }
    return
  }
  func.func @transform_0(%arg0: i32, %arg1: i32, %arg2: i32) -> (i32, i32) {
    %c0_i32 = arith.constant 0 : i32
    return %arg0, %arg2 : i32, i32
  }
  func.func @transform_1(%arg0: i32, %arg1: i32, %arg2: i32) -> (i32, i32) {
    %c0_i32 = arith.constant 0 : i32
    return %arg2, %arg1 : i32, i32
  }
  func.func @transform_2(%arg0: i32, %arg1: i32, %arg2: i32) -> (i32, i32) {
    %c0_i32 = arith.constant 0 : i32
    return %arg0, %arg1 : i32, i32
  }
}

</mosaic_0001>

<bundles_post_ra>
// kernel: tpu_custom_call.1
= control target key start
LH: loop header
LB: loop body
LE: loop exit
PB: predicated region body
PF: predicated region fallthrough
CT: control target
= control target key end

     0   :  { %7 = vsyncpa [#allocation4], 0  ;;  %s583_s0 = inlined_call_operand.hbm [shape: bf16[16,128], index: 0, kind: input, shape index: {}]   ;;  %s584_s1 = inlined_call_operand.hbm [shape: bf16[128,384], index: 1, kind: input, shape index: {}]   ;;  %s585_s2 = inlined_call_operand.hbm [shape: bf16[16,384], index: 2, kind: output, shape index: {}]  }
   0x1   :  { %8 = vsyncpa [#allocation7], 0 }
   0x2   :  { %9 = vsyncpa [#allocation5], 0  ;;  %s543_s9 = smov [#allocation3]  }
   0x3   :  { %s15_s10 = sshll.u32 %s543_s9, 4  ;;  %s16_s10 = int_to_ptr.vmem [resolvable:$true] %s15_s10 }
   0x4   :  { %s485_s11 = scalar_lea.vmem %s16_s10, 128  ;;  %p490_p1 = scmp.lt.s32.totalorder %s16_s10, %s16_s10 }
   0x5   :  { %p486_p0 = scmp.ne.s32.totalorder %s16_s10, %s485_s11  ;;  %p491_p2 = scmp.lt.s32.totalorder %s485_s11, %s485_s11 }
   0x7   :  { %p492_p3 = por %p491_p2, %p490_p1 }
   0x9   :  { %p493_p4 = pnand %p492_p3, %p486_p0 }
   0xb   :  { %496 = shalt.err (!%p493_p4)
}
   0xc   :  { %s544_s12 = smov 64   ;;  %s545_s13 = smov 4  }
   0xd   :  { %21 = dma.hbm_to_vmem [thread:$0]  %s583_s0, 128, %s16_s10, [#allocation4], %s544_s12, %s544_s12, %s545_s13  }
   0xe   :  { %s546_s16 = smov [#allocation6]  }
   0xf   :  { %s27_s17 = sshll.u32 %s546_s16, 4  ;;  %s28_s17 = int_to_ptr.vmem [resolvable:$true] %s27_s17 }
  0x10   :  { %s505_s18 = scalar_lea.vmem %s28_s17, 3072  ;;  %p510_p6 = scmp.lt.s32.totalorder %s28_s17, %s28_s17 }
  0x11   :  { %p506_p5 = scmp.ne.s32.totalorder %s28_s17, %s505_s18  ;;  %p511_p7 = scmp.lt.s32.totalorder %s505_s18, %s505_s18 }
  0x13   :  { %p512_p8 = por %p511_p7, %p510_p6 }
  0x15   :  { %p513_p9 = pnand %p512_p8, %p506_p5 }
  0x17   :  { %516 = shalt.err (!%p513_p9)
}
  0x18   :  { %s547_s19 = smov 192   ;;  %s548_s20 = smov 12  }
  0x19   :  { %33 = dma.hbm_to_vmem [thread:$0]  %s584_s1, 3072, %s28_s17, [#allocation7], %s547_s19, %s547_s19, %s548_s20  }
  0x1a   :  { %537 = dma.done.wait [#allocation4], 128  }
  0x1b   :  { %538 = vsyncadd [#allocation4], 4294967168 }
  0x1c   :  { %539 = dma.done.wait [#allocation7], 3072  }
  0x1d   :  { %540 = vsyncadd [#allocation7], 4294964224  ;;  %v549_v0 = vmov 0.0   ;;  %vm550_vm0 = vmmov 0   ;;  %v551_v1 = vmov 0   ;;  %v476_v26 = vld [vmem:[#allocation3] sm:$0xff]  }
  0x1e   :  { %414 = vmatprep.subr.bf16.mxu1 %v549_v0  ;;  %430 = vmatprep.mubr.msk.bf16.mxu1 %vm550_vm0, %v549_v0  ;;  %v444_v2 = vld [vmem:[#allocation6 + $0xac] ss:$12 sps:$4 sm:$0xff]   ;;  %v446_v3 = vld [vmem:[#allocation6 + $0xb0] ss:$12 sps:$4 sm:$0xff]   ;;  %v447_v4 = vld [vmem:[#allocation6 + $0xa8] ss:$12 sps:$4 sm:$0xff]  }
  0x1f   :  { %257 = vmatprep.mubr.bf16.mxu0 %v551_v1  ;;  %225 = vmatprep.subr.bf16.mxu0 %v444_v2  ;;  %v448_v5 = vld [vmem:[#allocation6 + $0x94] ss:$12 sps:$4 sm:$0xff]   ;;  %v450_v6 = vld [vmem:[#allocation6 + $0x98] ss:$12 sps:$4 sm:$0xff]   ;;  %v451_v7 = vld [vmem:[#allocation6 + $0x90] ss:$12 sps:$4 sm:$0xff]  }
  0x20   :  { %415 = vmatpush3.bf16.msra.mxu1 %v446_v3  ;;  %226 = vmatpush1.bf16.msra.mxu0 %v447_v4  ;;  %v452_v8 = vld [vmem:[#allocation6 + $0x7c] ss:$12 sps:$4 sm:$0xff]   ;;  %v454_v9 = vld [vmem:[#allocation6 + $0x80] ss:$12 sps:$4 sm:$0xff]   ;;  %v455_v10 = vld [vmem:[#allocation6 + $0x78] ss:$12 sps:$4 sm:$0xff]  }
  0x21   :  { %416 = vmatprep.subr.bf16.mxu1 %v549_v0  ;;  %227 = vmatprep.subr.bf16.mxu0 %v448_v5  ;;  %v456_v11 = vld [vmem:[#allocation6 + $0x64] ss:$12 sps:$4 sm:$0xff]   ;;  %v458_v12 = vld [vmem:[#allocation6 + $0x68] ss:$12 sps:$4 sm:$0xff]   ;;  %v459_v13 = vld [vmem:[#allocation6 + $0x60] ss:$12 sps:$4 sm:$0xff]  }
  0x22   :  { %v460_v14 = vld [vmem:[#allocation6 + $0x4c] ss:$12 sps:$4 sm:$0xff]   ;;  %v462_v15 = vld [vmem:[#allocation6 + $0x50] ss:$12 sps:$4 sm:$0xff]   ;;  %v463_v16 = vld [vmem:[#allocation6 + $0x48] ss:$12 sps:$4 sm:$0xff]  }
  0x23   :  { %v464_v17 = vld [vmem:[#allocation6 + $0x34] ss:$12 sps:$4 sm:$0xff]   ;;  %v466_v18 = vld [vmem:[#allocation6 + $0x38] ss:$12 sps:$4 sm:$0xff]   ;;  %v467_v19 = vld [vmem:[#allocation6 + $0x30] ss:$12 sps:$4 sm:$0xff]  }
  0x24   :  { %417 = vmatpush3.bf16.msra.mxu1 %v450_v6  ;;  %228 = vmatpush1.bf16.msra.mxu0 %v451_v7  ;;  %v468_v20 = vld [vmem:[#allocation6 + $0x1c] ss:$12 sps:$4 sm:$0xff]   ;;  %v470_v21 = vld [vmem:[#allocation6 + $0x20] ss:$12 sps:$4 sm:$0xff]   ;;  %v471_v22 = vld [vmem:[#allocation6 + $0x18] ss:$12 sps:$4 sm:$0xff]  }
  0x25   :  { %418 = vmatprep.subr.bf16.mxu1 %v549_v0  ;;  %229 = vmatprep.subr.bf16.mxu0 %v452_v8  ;;  %v472_v23 = vld [vmem:[#allocation6 + $0x4] ss:$12 sps:$4 sm:$0xff]   ;;  %v474_v24 = vld [vmem:[#allocation6 + $0x8] ss:$12 sps:$4 sm:$0xff]   ;;  %v475_v25 = vld [vmem:[#allocation6] ss:$12 sps:$4 sm:$0xff]  }
  0x26   :  { %s552_s0 = smov [#allocation8]  }
  0x27   :  { %s359_s1 = sshll.u32 %s552_s0, 4  ;;  %s360_s1 = int_to_ptr.vmem [resolvable:$true] %s359_s1 }
  0x28   :  { %419 = vmatpush3.bf16.msra.mxu1 %v454_v9  ;;  %230 = vmatpush1.bf16.msra.mxu0 %v455_v10  ;;  %s517_s23 = scalar_lea.vmem %s360_s1, 384  ;;  %p522_p11 = scmp.lt.s32.totalorder %s360_s1, %s360_s1 }
  0x29   :  { %420 = vmatprep.subr.bf16.mxu1 %v549_v0  ;;  %231 = vmatprep.subr.bf16.mxu0 %v456_v11  ;;  %p518_p10 = scmp.ne.s32.totalorder %s360_s1, %s517_s23  ;;  %p523_p12 = scmp.lt.s32.totalorder %s517_s23, %s517_s23 }
  0x2b   :  { %p524_p13 = por %p523_p12, %p522_p11 }
  0x2c   :  { %421 = vmatpush3.bf16.msra.mxu1 %v458_v12  ;;  %232 = vmatpush1.bf16.msra.mxu0 %v459_v13 }
  0x2d   :  { %422 = vmatprep.subr.bf16.mxu1 %v549_v0  ;;  %233 = vmatprep.subr.bf16.mxu0 %v460_v14  ;;  %p525_p0 = pnand %p524_p13, %p518_p10 }
  0x30   :  { %423 = vmatpush3.bf16.msra.mxu1 %v462_v15  ;;  %234 = vmatpush1.bf16.msra.mxu0 %v463_v16 }
  0x31   :  { %424 = vmatprep.subr.bf16.mxu1 %v549_v0  ;;  %235 = vmatprep.subr.bf16.mxu0 %v464_v17 }
  0x34   :  { %425 = vmatpush3.bf16.msra.mxu1 %v466_v18  ;;  %236 = vmatpush1.bf16.msra.mxu0 %v467_v19 }
  0x35   :  { %426 = vmatprep.subr.bf16.mxu1 %v549_v0  ;;  %237 = vmatprep.subr.bf16.mxu0 %v468_v20 }
  0x38   :  { %427 = vmatpush3.bf16.msra.mxu1 %v470_v21  ;;  %238 = vmatpush1.bf16.msra.mxu0 %v471_v22 }
  0x39   :  { %428 = vmatprep.subr.bf16.mxu1 %v549_v0  ;;  %239 = vmatprep.subr.bf16.mxu0 %v472_v23 }
  0x3c   :  { %429 = vmatpush3.bf16.msra.mxu1 %v474_v24  ;;  %240 = vmatpush1.bf16.msra.mxu0 %v475_v25 }
  0x3f   :  { %431 = vmatmul.mubr.bf16.vlgmr.msra.gmra.mxu1 %v476_v26  ;;  %258 = vmatmul.mubr.bf16.vlgmr.msra.gmra.mxu0 %v476_v26 }
  0xff   :  { %v302_v27 = vpop.f32.mrf.mxu1  ;;  %v259_v29 = vpop.f32.mrf.mxu0 }
 0x100   :  { %v402_v28 = vpack.c.bf16 %v302_v27, %v302_v27 }
 0x101   :  { %v432_v30 = vpop.f32.mrf.mxu1  ;;  %v261_v31 = vpop.f32.mrf.mxu0 }
 0x102   :  { %351 = vst [vmem:[#allocation8 + $0x8] sm:$0xf] %v402_v28  ;;  %v401_v32 = vpack.c.bf16 %v261_v31, %v259_v29 }
 0x103   :  { %v305_v33 = vpop.f32.mrf.mxu1  ;;  %v263_v35 = vpop.f32.mrf.mxu0 }
 0x104   :  { %v404_v34 = vpack.c.bf16 %v305_v33, %v305_v33  ;;  %350 = vst [vmem:[#allocation8] sm:$0xff] %v401_v32 }
 0x105   :  { %v433_v36 = vpop.f32.mrf.mxu1  ;;  %v265_v37 = vpop.f32.mrf.mxu0 }
 0x106   :  { %353 = vst [vmem:[#allocation8 + $0x14] sm:$0xf] %v404_v34  ;;  %v403_v38 = vpack.c.bf16 %v265_v37, %v263_v35 }
 0x108   :  { %352 = vst [vmem:[#allocation8 + $0xc] sm:$0xff] %v403_v38 }
 0x109   :  { %528 = shalt.err (!%p525_p0)
}
 0x10a   :  { %365 = dma.vmem_to_hbm [thread:$0]  %s360_s1, 384, %s585_s2, [#allocation5], %s547_s19, %s547_s19, %s548_s20  }
 0x10b   :  { %541 = dma.done.wait [#allocation5], 384  }
 0x10c   :  { %542 = vsyncadd [#allocation5], 4294966912 }
 0x10d   :  { %369 = vsyncpa [#allocation4], 1 }
 0x10e   :  { %370 = vsyncpa [#allocation7], 1 }
 0x10f   :  { %371 = vsyncpa [#allocation5], 1 }

</bundles_post_ra>
